<compile_context>
chip_gen: v7x
topology: tpu7x:2x2x1
jax: 0.10.0
libtpu: 0.0.40
codegen_flags: <defaults>
</compile_context>

<pallas_src>
import math

import jax
import jax.numpy as jnp
from jax.experimental import pallas as pl
from jax.experimental.pallas import tpu as pltpu


_SQRT_HALF = 1.0 / math.sqrt(2.0)


def _erf_approx(z):
    """Abramowitz & Stegun 7.1.26 rational erf approximation (|err| <= 1.5e-7)."""
    p = 0.3275911
    a1, a2, a3, a4, a5 = (0.254829592, -0.284496736, 1.421413741,
                          -1.453152027, 1.061405429)
    az = jnp.abs(z)
    # Divide goes to the EUP slot (vrcp), keeping the VALU slot for the poly.
    t = pl.reciprocal(1.0 + p * az, approx=True)
    poly = ((((a5 * t + a4) * t + a3) * t + a2) * t + a1) * t
    y = 1.0 - poly * jnp.exp(-az * az)
    return jnp.where(z >= 0, y, -y)


def _gelu_exact(x):
    # erf-based GELU, matching torch.nn.functional.gelu (approximate='none').
    return 0.5 * x * (1.0 + _erf_approx(x * _SQRT_HALF))


def _bert_intermediate_kernel(x_ref, w_ref, b_ref, o_ref):
    # x_ref: [TM, H] bf16, w_ref: [H, TN] bf16, b_ref: [1, TN] f32, o_ref: [TM, TN]
    acc = jnp.dot(x_ref[...], w_ref[...], preferred_element_type=jnp.float32)
    acc = acc + b_ref[...]                      # bias add in f32
    o_ref[...] = _gelu_exact(acc).astype(o_ref.dtype)


def _make_call(*, M, H, I, bm, bn, out_dtype, weight_mode):
    n_tiles = pl.cdiv(I, bn)
    m_tiles = pl.cdiv(M, bm)
    # Grid ordered (I-tiles, M-tiles): the weight/bias block index only depends
    # on the OUTER axis, so the (H, bn) weight tile is invariant across the
    # whole inner M sweep (DMA'd n_tiles times total; once for the default bn=I).
    grid = (n_tiles, m_tiles)

    w_kwargs = {} if weight_mode is None else {"pipeline_mode": weight_mode}

    out_itemsize = jnp.dtype(out_dtype).itemsize
    # Conservative (double-buffered everywhere) VMEM estimate.
    vmem_needed = (2 * bm * H * 2            # x tiles   (bf16)
                   + 2 * H * bn * 2          # weight    (bf16)
                   + 2 * bn * 4              # bias      (f32)
                   + 2 * bm * bn * out_itemsize)
    vmem_limit = max(32 * 1024 * 1024,
                     min(int(vmem_needed * 3 // 2), 48 * 1024 * 1024))

    cost = pl.CostEstimate(
        flops=2 * M * H * I,
        transcendentals=2 * M * I,           # exp + reciprocal per output element
        bytes_accessed=M * H * 2 + H * I * 2 + I * 4 + M * I * out_itemsize)

    return pl.pallas_call(
        _bert_intermediate_kernel,
        out_shape=jax.ShapeDtypeStruct((M, I), out_dtype),
        grid=grid,
        in_specs=[
            pl.BlockSpec((bm, H), lambda j, i: (i, 0)),               # activations
            pl.BlockSpec((H, bn), lambda j, i: (0, j), **w_kwargs),   # resident weight
            pl.BlockSpec((1, bn), lambda j, i: (0, j)),               # bias
        ],
        out_specs=pl.BlockSpec((bm, bn), lambda j, i: (i, j)),        # lane-dense slab
        compiler_params=pltpu.CompilerParams(
            dimension_semantics=("parallel", "parallel"),
            vmem_limit_bytes=vmem_limit),
        cost_estimate=cost,
    )


def bert_intermediate(hidden, dense_w, dense_b, threshold=None,
                      *, block_m=512, block_n=None):
    """hidden: [B, S, H]; dense_w: [H, I] (transposed torch weight); dense_b: [I] or [1, I]."""
    del threshold  # accepted by the torch module's forward but never used
    B, S, H = hidden.shape
    Hw, I = dense_w.shape
    assert Hw == H, "dense_w must be [hidden_size, intermediate_size]"
    M = B * S

    # bf16 operands into the MXU (tiles are DMA'd as bf16); f32 accumulate in-kernel.
    x = hidden.reshape(M, H).astype(jnp.bfloat16)
    w = dense_w.astype(jnp.bfloat16)
    b = jnp.asarray(dense_b, jnp.float32).reshape(1, I)

    bm = min(block_m, M)
    bn = I if block_n is None else min(block_n, I)   # weight-resident by default
    out_dtype = hidden.dtype

    try:
        out = _make_call(M=M, H=H, I=I, bm=bm, bn=bn, out_dtype=out_dtype,
                         weight_mode=pl.Buffered(1))(x, w, b)
    except Exception:
        # Fallback: default (double-buffered) weight pipelining.
        out = _make_call(M=M, H=H, I=I, bm=bm, bn=bn, out_dtype=out_dtype,
                         weight_mode=None)(x, w, b)
    return out.reshape(B, S, I)


def reference(hidden, dense_w, dense_b):
    """Pure-JAX mirror of the torch forward (same bf16-operand matmul, exact erf GELU)."""
    x = jnp.dot(hidden.astype(jnp.bfloat16), dense_w.astype(jnp.bfloat16),
                preferred_element_type=jnp.float32)
    x = x + jnp.asarray(dense_b, jnp.float32).reshape(1, 1, -1)
    return (0.5 * x * (1.0 + jax.lax.erf(x * _SQRT_HALF))).astype(hidden.dtype)


if __name__ == "__main__":
    B, S, H, I = 2, 8, 32, 128   # batch, seq, hidden_size, intermediate_size
    key = jax.random.PRNGKey(0)
    k0, k1, k2 = jax.random.split(key, 3)

    hidden = jax.random.normal(k0, (B, S, H), jnp.float32)
    dense_w = (0.05 * jax.random.normal(k1, (H, I))).astype(jnp.float32)
    dense_b = (0.05 * jax.random.normal(k2, (I,))).astype(jnp.float32)

    out = bert_intermediate(hidden, dense_w, dense_b, threshold=0.5)
    out = jax.block_until_ready(out)

    ref = reference(hidden, dense_w, dense_b)
    assert out.shape == (B, S, I)
    max_err = float(jnp.max(jnp.abs(out - ref)))
    assert jnp.allclose(out, ref, atol=2e-2, rtol=2e-2), f"max_err={max_err}"

    print("KERNEL_OK")
</pallas_src>

<mosaic_0001>
module attributes {stable_mosaic.version = 11 : i64} {
  func.func @_bert_intermediate_kernel(%arg0: i32, %arg1: i32, %arg2: memref<16x32xbf16, #tpu.memory_space<vmem>>, %arg3: memref<32x128xbf16, #tpu.memory_space<vmem>>, %arg4: memref<1x128xf32, #tpu.memory_space<vmem>>, %arg5: memref<16x128xf32, #tpu.memory_space<vmem>>) attributes {dimension_semantics = [#tpu.dimension_semantics<parallel>, #tpu.dimension_semantics<parallel>], iteration_bounds = array<i64: 1, 1>, scalar_prefetch = 0 : i64, scratch_operands = 0 : i64, tpu.core_type = #tpu.core_type<tc>, window_params = [{transform_indices = @transform_0, window_bounds = array<i64: 16, 32>}, {pipeline_mode = #tpu.pipeline_mode<synchronous>, transform_indices = @transform_1, window_bounds = array<i64: 32, 128>}, {transform_indices = @transform_2, window_bounds = array<i64: 1, 128>}, {transform_indices = @transform_3, window_bounds = array<i64: 16, 128>}]} {
    %c0 = arith.constant 0 : index
    %c0_0 = arith.constant 0 : index
    %0 = vector.load %arg2[%c0, %c0_0] : memref<16x32xbf16, #tpu.memory_space<vmem>>, vector<16x32xbf16>
    %c0_1 = arith.constant 0 : index
    %c0_2 = arith.constant 0 : index
    %1 = vector.load %arg3[%c0_1, %c0_2] : memref<32x128xbf16, #tpu.memory_space<vmem>>, vector<32x128xbf16>
    %cst = arith.constant dense<0.000000e+00> : vector<16x128xf32>
    %2 = tpu.matmul %0, %1, %cst {dimension_numbers = #tpu.dot_dimension_numbers<[1], [0], [0], [1], [0, 0, 1, 1], [], []>} : vector<16x32xbf16>, vector<32x128xbf16>, vector<16x128xf32> -> vector<16x128xf32>
    %c0_3 = arith.constant 0 : index
    %c0_4 = arith.constant 0 : index
    %3 = vector.load %arg4[%c0_3, %c0_4] : memref<1x128xf32, #tpu.memory_space<vmem>>, vector<1x128xf32>
    %4 = vector.broadcast %3 : vector<1x128xf32> to vector<16x128xf32>
    %5 = arith.addf %2, %4 : vector<16x128xf32>
    %cst_5 = arith.constant 5.000000e-01 : f32
    %6 = vector.broadcast %cst_5 : f32 to vector<16x128xf32>
    %7 = arith.mulf %6, %5 : vector<16x128xf32>
    %cst_6 = arith.constant 0.707106769 : f32
    %8 = vector.broadcast %cst_6 : f32 to vector<16x128xf32>
    %9 = arith.mulf %5, %8 : vector<16x128xf32>
    %10 = math.absf %9 : vector<16x128xf32>
    %cst_7 = arith.constant 0.327591091 : f32
    %11 = vector.broadcast %cst_7 : f32 to vector<16x128xf32>
    %12 = arith.mulf %11, %10 : vector<16x128xf32>
    %cst_8 = arith.constant 1.000000e+00 : f32
    %13 = vector.broadcast %cst_8 : f32 to vector<16x128xf32>
    %14 = arith.addf %13, %12 : vector<16x128xf32>
    %15 = tpu.reciprocal %14 {approx = true} : vector<16x128xf32> -> vector<16x128xf32>
    %cst_9 = arith.constant 1.06140542 : f32
    %16 = vector.broadcast %cst_9 : f32 to vector<16x128xf32>
    %17 = arith.mulf %16, %15 : vector<16x128xf32>
    %cst_10 = arith.constant -1.45315206 : f32
    %18 = vector.broadcast %cst_10 : f32 to vector<16x128xf32>
    %19 = arith.addf %17, %18 : vector<16x128xf32>
    %20 = arith.mulf %19, %15 : vector<16x128xf32>
    %cst_11 = arith.constant 1.42141378 : f32
    %21 = vector.broadcast %cst_11 : f32 to vector<16x128xf32>
    %22 = arith.addf %20, %21 : vector<16x128xf32>
    %23 = arith.mulf %22, %15 : vector<16x128xf32>
    %cst_12 = arith.constant -0.284496725 : f32
    %24 = vector.broadcast %cst_12 : f32 to vector<16x128xf32>
    %25 = arith.addf %23, %24 : vector<16x128xf32>
    %26 = arith.mulf %25, %15 : vector<16x128xf32>
    %cst_13 = arith.constant 0.254829586 : f32
    %27 = vector.broadcast %cst_13 : f32 to vector<16x128xf32>
    %28 = arith.addf %26, %27 : vector<16x128xf32>
    %29 = arith.mulf %28, %15 : vector<16x128xf32>
    %cst_14 = arith.constant 0.000000e+00 : f32
    %30 = vector.broadcast %cst_14 : f32 to vector<16x128xf32>
    %31 = arith.subf %30, %10 : vector<16x128xf32>
    %32 = arith.mulf %31, %10 : vector<16x128xf32>
    %33 = math.exp %32 : vector<16x128xf32>
    %34 = arith.mulf %29, %33 : vector<16x128xf32>
    %cst_15 = arith.constant 1.000000e+00 : f32
    %35 = vector.broadcast %cst_15 : f32 to vector<16x128xf32>
    %36 = arith.subf %35, %34 : vector<16x128xf32>
    %cst_16 = arith.constant 0.000000e+00 : f32
    %37 = vector.broadcast %cst_16 : f32 to vector<16x128xf32>
    %38 = arith.cmpf oge, %9, %37 : vector<16x128xf32>
    %cst_17 = arith.constant 0.000000e+00 : f32
    %39 = vector.broadcast %cst_17 : f32 to vector<16x128xf32>
    %40 = arith.subf %39, %36 : vector<16x128xf32>
    %41 = arith.select %38, %36, %40 : vector<16x128xi1>, vector<16x128xf32>
    %cst_18 = arith.constant 1.000000e+00 : f32
    %42 = vector.broadcast %cst_18 : f32 to vector<16x128xf32>
    %43 = arith.addf %42, %41 : vector<16x128xf32>
    %44 = arith.mulf %7, %43 : vector<16x128xf32>
    %c0_19 = arith.constant 0 : index
    %c0_20 = arith.constant 0 : index
    %45 = vector.load %arg5[%c0_19, %c0_20] : memref<16x128xf32, #tpu.memory_space<vmem>>, vector<16x128xf32>
    tpu.vector_store %arg5[%c0_19, %c0_20], %44 {strides = array<i32>} : memref<16x128xf32, #tpu.memory_space<vmem>>, vector<16x128xf32>,
    return
  }
  func.func @transform_0(%arg0: i32, %arg1: i32) -> (i32, i32) {
    %c0_i32 = arith.constant 0 : i32
    %c0_i32_0 = arith.constant 0 : i32
    return %arg1, %c0_i32 : i32, i32
  }
  func.func @transform_1(%arg0: i32, %arg1: i32) -> (i32, i32) {
    %c0_i32 = arith.constant 0 : i32
    %c0_i32_0 = arith.constant 0 : i32
    return %c0_i32, %arg0 : i32, i32
  }
  func.func @transform_2(%arg0: i32, %arg1: i32) -> (i32, i32) {
    %c0_i32 = arith.constant 0 : i32
    %c0_i32_0 = arith.constant 0 : i32
    return %c0_i32, %arg0 : i32, i32
  }
  func.func @transform_3(%arg0: i32, %arg1: i32) -> (i32, i32) {
    %c0_i32 = arith.constant 0 : i32
    return %arg1, %arg0 : i32, i32
  }
}

module attributes {stable_mosaic.version = 11 : i64} {
  func.func @_bert_intermediate_kernel(%arg0: i32, %arg1: i32, %arg2: memref<16x32xbf16, #tpu.memory_space<vmem>>, %arg3: memref<32x128xbf16, #tpu.memory_space<vmem>>, %arg4: memref<1x128xf32, #tpu.memory_space<vmem>>, %arg5: memref<16x128xf32, #tpu.memory_space<vmem>>) attributes {dimension_semantics = [#tpu.dimension_semantics<parallel>, #tpu.dimension_semantics<parallel>], iteration_bounds = array<i64: 1, 1>, scalar_prefetch = 0 : i64, scratch_operands = 0 : i64, tpu.core_type = #tpu.core_type<tc>, window_params = [{transform_indices = @transform_0, window_bounds = array<i64: 16, 32>}, {transform_indices = @transform_1, window_bounds = array<i64: 32, 128>}, {transform_indices = @transform_2, window_bounds = array<i64: 1, 128>}, {transform_indices = @transform_3, window_bounds = array<i64: 16, 128>}]} {
    %c0 = arith.constant 0 : index
    %c0_0 = arith.constant 0 : index
    %0 = vector.load %arg2[%c0, %c0_0] : memref<16x32xbf16, #tpu.memory_space<vmem>>, vector<16x32xbf16>
    %c0_1 = arith.constant 0 : index
    %c0_2 = arith.constant 0 : index
    %1 = vector.load %arg3[%c0_1, %c0_2] : memref<32x128xbf16, #tpu.memory_space<vmem>>, vector<32x128xbf16>
    %cst = arith.constant dense<0.000000e+00> : vector<16x128xf32>
    %2 = tpu.matmul %0, %1, %cst {dimension_numbers = #tpu.dot_dimension_numbers<[1], [0], [0], [1], [0, 0, 1, 1], [], []>} : vector<16x32xbf16>, vector<32x128xbf16>, vector<16x128xf32> -> vector<16x128xf32>
    %c0_3 = arith.constant 0 : index
    %c0_4 = arith.constant 0 : index
    %3 = vector.load %arg4[%c0_3, %c0_4] : memref<1x128xf32, #tpu.memory_space<vmem>>, vector<1x128xf32>
    %4 = vector.broadcast %3 : vector<1x128xf32> to vector<16x128xf32>
    %5 = arith.addf %2, %4 : vector<16x128xf32>
    %cst_5 = arith.constant 5.000000e-01 : f32
    %6 = vector.broadcast %cst_5 : f32 to vector<16x128xf32>
    %7 = arith.mulf %6, %5 : vector<16x128xf32>
    %cst_6 = arith.constant 0.707106769 : f32
    %8 = vector.broadcast %cst_6 : f32 to vector<16x128xf32>
    %9 = arith.mulf %5, %8 : vector<16x128xf32>
    %10 = math.absf %9 : vector<16x128xf32>
    %cst_7 = arith.constant 0.327591091 : f32
    %11 = vector.broadcast %cst_7 : f32 to vector<16x128xf32>
    %12 = arith.mulf %11, %10 : vector<16x128xf32>
    %cst_8 = arith.constant 1.000000e+00 : f32
    %13 = vector.broadcast %cst_8 : f32 to vector<16x128xf32>
    %14 = arith.addf %13, %12 : vector<16x128xf32>
    %15 = tpu.reciprocal %14 {approx = true} : vector<16x128xf32> -> vector<16x128xf32>
    %cst_9 = arith.constant 1.06140542 : f32
    %16 = vector.broadcast %cst_9 : f32 to vector<16x128xf32>
    %17 = arith.mulf %16, %15 : vector<16x128xf32>
    %cst_10 = arith.constant -1.45315206 : f32
    %18 = vector.broadcast %cst_10 : f32 to vector<16x128xf32>
    %19 = arith.addf %17, %18 : vector<16x128xf32>
    %20 = arith.mulf %19, %15 : vector<16x128xf32>
    %cst_11 = arith.constant 1.42141378 : f32
    %21 = vector.broadcast %cst_11 : f32 to vector<16x128xf32>
    %22 = arith.addf %20, %21 : vector<16x128xf32>
    %23 = arith.mulf %22, %15 : vector<16x128xf32>
    %cst_12 = arith.constant -0.284496725 : f32
    %24 = vector.broadcast %cst_12 : f32 to vector<16x128xf32>
    %25 = arith.addf %23, %24 : vector<16x128xf32>
    %26 = arith.mulf %25, %15 : vector<16x128xf32>
    %cst_13 = arith.constant 0.254829586 : f32
    %27 = vector.broadcast %cst_13 : f32 to vector<16x128xf32>
    %28 = arith.addf %26, %27 : vector<16x128xf32>
    %29 = arith.mulf %28, %15 : vector<16x128xf32>
    %cst_14 = arith.constant 0.000000e+00 : f32
    %30 = vector.broadcast %cst_14 : f32 to vector<16x128xf32>
    %31 = arith.subf %30, %10 : vector<16x128xf32>
    %32 = arith.mulf %31, %10 : vector<16x128xf32>
    %33 = math.exp %32 : vector<16x128xf32>
    %34 = arith.mulf %29, %33 : vector<16x128xf32>
    %cst_15 = arith.constant 1.000000e+00 : f32
    %35 = vector.broadcast %cst_15 : f32 to vector<16x128xf32>
    %36 = arith.subf %35, %34 : vector<16x128xf32>
    %cst_16 = arith.constant 0.000000e+00 : f32
    %37 = vector.broadcast %cst_16 : f32 to vector<16x128xf32>
    %38 = arith.cmpf oge, %9, %37 : vector<16x128xf32>
    %cst_17 = arith.constant 0.000000e+00 : f32
    %39 = vector.broadcast %cst_17 : f32 to vector<16x128xf32>
    %40 = arith.subf %39, %36 : vector<16x128xf32>
    %41 = arith.select %38, %36, %40 : vector<16x128xi1>, vector<16x128xf32>
    %cst_18 = arith.constant 1.000000e+00 : f32
    %42 = vector.broadcast %cst_18 : f32 to vector<16x128xf32>
    %43 = arith.addf %42, %41 : vector<16x128xf32>
    %44 = arith.mulf %7, %43 : vector<16x128xf32>
    %c0_19 = arith.constant 0 : index
    %c0_20 = arith.constant 0 : index
    %45 = vector.load %arg5[%c0_19, %c0_20] : memref<16x128xf32, #tpu.memory_space<vmem>>, vector<16x128xf32>
    tpu.vector_store %arg5[%c0_19, %c0_20], %44 {strides = array<i32>} : memref<16x128xf32, #tpu.memory_space<vmem>>, vector<16x128xf32>,
    return
  }
  func.func @transform_0(%arg0: i32, %arg1: i32) -> (i32, i32) {
    %c0_i32 = arith.constant 0 : i32
    %c0_i32_0 = arith.constant 0 : i32
    return %arg1, %c0_i32 : i32, i32
  }
  func.func @transform_1(%arg0: i32, %arg1: i32) -> (i32, i32) {
    %c0_i32 = arith.constant 0 : i32
    %c0_i32_0 = arith.constant 0 : i32
    return %c0_i32, %arg0 : i32, i32
  }
  func.func @transform_2(%arg0: i32, %arg1: i32) -> (i32, i32) {
    %c0_i32 = arith.constant 0 : i32
    %c0_i32_0 = arith.constant 0 : i32
    return %c0_i32, %arg0 : i32, i32
  }
  func.func @transform_3(%arg0: i32, %arg1: i32) -> (i32, i32) {
    %c0_i32 = arith.constant 0 : i32
    return %arg1, %arg0 : i32, i32
  }
}

</mosaic_0001>

<bundles_post_ra>
// kernel: tpu_custom_call.1
= control target key start
LH: loop header
LB: loop body
LE: loop exit
PB: predicated region body
PF: predicated region fallthrough
CT: control target
= control target key end

     0   :  { %8 = vsyncpa [#allocation3], 0  ;;  %s367_s0 = inlined_call_operand.hbm [shape: bf16[16,32], index: 0, kind: input, shape index: {}]   ;;  %s368_s1 = inlined_call_operand.hbm [shape: bf16[32,128], index: 1, kind: input, shape index: {}]   ;;  %s369_s2 = inlined_call_operand.vmem [shape: f32[1,128], index: 2, kind: input, shape index: {}]   ;;  %s370_s3 = inlined_call_operand.hbm [shape: f32[16,128], index: 3, kind: output, shape index: {}]  }
   0x1   :  { %9 = vsyncpa [#allocation6], 0 }
   0x2   :  { %10 = vsyncpa [#allocation4], 0  ;;  %s299_s12 = smov [#allocation2]   ;;  %s227_s16 = scalar_lea.hbm %s367_s0, 128 }
   0x3   :  { %s16_s13 = sshll.u32 %s299_s12, 4  ;;  %p228_p0 = scmp.ne.s32.totalorder %s367_s0, %s227_s16  ;;  %s17_s13 = int_to_ptr.vmem [resolvable:$true] %s16_s13 }
   0x4   :  { %p231_p1 = scmp.lt.u32.totalorder %s227_s16, %s367_s0 }
   0x6   :  { %p233_p2 = pnand %p231_p1, %p228_p0 }
   0x8   :  { %236 = shalt.err (!%p233_p2)
}
   0x9   :  { %s237_s21 = scalar_lea.vmem %s17_s13, 128  ;;  %p242_p4 = scmp.lt.s32.totalorder %s17_s13, %s17_s13 }
   0xa   :  { %p238_p3 = scmp.ne.s32.totalorder %s17_s13, %s237_s21  ;;  %p243_p5 = scmp.lt.s32.totalorder %s237_s21, %s237_s21 }
   0xc   :  { %p244_p6 = por %p243_p5, %p242_p4 }
   0xe   :  { %p245_p7 = pnand %p244_p6, %p238_p3 }
  0x10   :  { %248 = shalt.err (!%p245_p7)
}
  0x11   :  { %s300_s22 = smov 64   ;;  %s301_s23 = smov 4  }
  0x12   :  { %22 = dma.hbm_to_vmem [thread:$0]  %s367_s0, 128, %s17_s13, [#allocation3], %s300_s22, %s300_s22, %s301_s23  }
  0x13   :  { %s302_s26 = smov [#allocation5]   ;;  %s249_s30 = scalar_lea.hbm %s368_s1, 256 }
  0x14   :  { %s28_s27 = sshll.u32 %s302_s26, 4  ;;  %p250_p8 = scmp.ne.s32.totalorder %s368_s1, %s249_s30  ;;  %s29_s27 = int_to_ptr.vmem [resolvable:$true] %s28_s27 }
  0x15   :  { %p253_p9 = scmp.lt.u32.totalorder %s249_s30, %s368_s1 }
  0x17   :  { %p255_p10 = pnand %p253_p9, %p250_p8 }
  0x19   :  { %258 = shalt.err (!%p255_p10)
}
  0x1a   :  { %s259_s8 = scalar_lea.vmem %s29_s27, 256  ;;  %p264_p12 = scmp.lt.s32.totalorder %s29_s27, %s29_s27 }
  0x1b   :  { %p260_p11 = scmp.ne.s32.totalorder %s29_s27, %s259_s8  ;;  %p265_p13 = scmp.lt.s32.totalorder %s259_s8, %s259_s8 }
  0x1d   :  { %p266_p0 = por %p265_p13, %p264_p12 }
  0x1f   :  { %p267_p1 = pnand %p266_p0, %p260_p11 }
  0x21   :  { %270 = shalt.err (!%p267_p1)
}
  0x22   :  { %34 = dma.hbm_to_vmem [thread:$0]  %s368_s1, 256, %s29_s27, [#allocation6], %s300_s22, %s300_s22, %s301_s23  }
  0x23   :  { %293 = dma.done.wait [#allocation3], 128  }
  0x24   :  { %294 = vsyncadd [#allocation3], 4294967168 }
  0x25   :  { %295 = dma.done.wait [#allocation6], 256  }
  0x26   :  { %296 = vsyncadd [#allocation6], 4294967040  ;;  %v303_v0 = vmov 0.0   ;;  %vm304_vm0 = vmmov 0   ;;  %v216_v1 = vld [vmem:[#allocation5] sm:$0xff]   ;;  %v217_v2 = vld [vmem:[#allocation5 + $0x8] sm:$0xff]  }
  0x27   :  { %199 = vmatprep.subr.bf16.mxu0 %v303_v0  ;;  %203 = vmatprep.mubr.msk.bf16.mxu0 %vm304_vm0, %v303_v0  ;;  %v218_v3 = vld [vmem:[#allocation2] sm:$0xff]   ;;  %vm74_vm1 = vcmask 261120   ;;  %s305_s1 = smov [#allocation7]  }
  0x28   :  { %200 = vmatpush3.bf16.msra.mxu0 %v216_v1  ;;  %v191_v4 = vld [vmem:[%s369_s2] ss:$0 sm:$0xff]  ;;  %s178_s2 = sshll.u32 %s305_s1, 4  ;;  %s179_s2 = int_to_ptr.vmem [resolvable:$true] %s178_s2 }
  0x29   :  { %201 = vmatprep.subr.bf16.mxu0 %v303_v0  ;;  %s271_s12 = scalar_lea.vmem %s179_s2, 256  ;;  %p276_p3 = scmp.lt.s32.totalorder %s179_s2, %s179_s2 }
  0x2a   :  { %p272_p2 = scmp.ne.s32.totalorder %s179_s2, %s271_s12  ;;  %p277_p4 = scmp.lt.s32.totalorder %s271_s12, %s271_s12 }
  0x2c   :  { %202 = vmatpush3.bf16.msra.mxu0 %v217_v2  ;;  %p278_p5 = por %p277_p4, %p276_p3 }
  0x2e   :  { %p279_p6 = pnand %p278_p5, %p272_p2 }
  0x2f   :  { %204 = vmatmul.mubr.msk.bf16.vlgmr.msra.gmra.mrb[0].mxu0 %vm74_vm1, %v218_v3 }
 0x102   :  { %v112_v5 = vpop.f32.mrb[0].mxu0 }
 0x103   :  { %v113_v6 = vadd.f32 %v191_v4, %v112_v5  ;;  %v205_v7 = vpop.f32.mrb[1].mxu0 }
 0x104   :  { %v115_v8 = vpop.f32.mrb[2].mxu0 }
 0x105   :  { %v121_v9 = vmul.f32 0.70710677, %v113_v6  ;;  %v116_v10 = vadd.f32 %v191_v4, %v115_v8  ;;  %v206_v11 = vpop.f32.mrb[3].mxu0  ;;  %v119_v53 = vmul.f32 0.5, %v113_v6 }
 0x107   :  { %v123_v12 = vand.u32 2147483647, %v121_v9  ;;  %v122_v13 = vmul.f32 0.70710677, %v116_v10  ;;  %vm161_vm2 = vcmp.ge.f32.partialorder %v121_v9, 0.0  ;;  %v120_v58 = vmul.f32 0.5, %v116_v10 }
 0x109   :  { %v125_v14 = vmul.f32 0.3275911, %v123_v12  ;;  %v124_v15 = vand.u32 2147483647, %v122_v13  ;;  %v149_v19 = vsub.f32 0.0, %v123_v12  ;;  %vm162_vm3 = vcmp.ge.f32.partialorder %v122_v13, 0.0 }
 0x10b   :  { %v127_v16 = vadd.f32 1.0, %v125_v14  ;;  %v126_v17 = vmul.f32 0.3275911, %v124_v15  ;;  %v150_v20 = vsub.f32 0.0, %v124_v15  ;;  %v151_v22 = vmul.f32 %v149_v19, %v123_v12 }
 0x10d   :  { %219 = vrcp.f32 %v127_v16  ;;  %v128_v18 = vadd.f32 1.0, %v126_v17  ;;  %v152_v26 = vmul.f32 %v150_v20, %v124_v15  ;;  %v153_v27 = vmul.f32 1.442695, %v151_v22 }
 0x10f   :  { %221 = vrcp.f32 %v128_v18  ;;  %v155_v32 = vmul.f32 1.442695, %v152_v26 }
 0x110   :  { %223 = vpow2.f32 %v153_v27 }
 0x111   :  { %225 = vpow2.f32 %v155_v32 }
 0x117   :  { %v220_v21 = vpop.eup %219 }
 0x118   :  { %v131_v23 = vmul.f32 1.0614054, %v220_v21 }
 0x119   :  { %v222_v24 = vpop.eup %221 }
 0x11a   :  { %v133_v25 = vadd.f32 -1.4531521, %v131_v23  ;;  %v132_v28 = vmul.f32 1.0614054, %v222_v24  ;;  %v224_v43 = vpop.eup %223 }
 0x11b   :  { %v226_v47 = vpop.eup %225 }
 0x11c   :  { %v135_v29 = vmul.f32 %v220_v21, %v133_v25  ;;  %v134_v30 = vadd.f32 -1.4531521, %v132_v28 }
 0x11e   :  { %v137_v31 = vadd.f32 1.4214138, %v135_v29  ;;  %v136_v33 = vmul.f32 %v222_v24, %v134_v30 }
 0x120   :  { %v139_v34 = vmul.f32 %v220_v21, %v137_v31  ;;  %v138_v35 = vadd.f32 1.4214138, %v136_v33 }
 0x122   :  { %v141_v36 = vadd.f32 -0.28449672, %v139_v34  ;;  %v140_v37 = vmul.f32 %v222_v24, %v138_v35 }
 0x124   :  { %v143_v38 = vmul.f32 %v220_v21, %v141_v36  ;;  %v142_v39 = vadd.f32 -0.28449672, %v140_v37 }
 0x126   :  { %v145_v40 = vadd.f32 0.2548296, %v143_v38  ;;  %v144_v41 = vmul.f32 %v222_v24, %v142_v39 }
 0x128   :  { %v147_v42 = vmul.f32 %v220_v21, %v145_v40  ;;  %v146_v44 = vadd.f32 0.2548296, %v144_v41 }
 0x12a   :  { %v157_v45 = vmul.f32 %v224_v43, %v147_v42  ;;  %v148_v46 = vmul.f32 %v222_v24, %v146_v44 }
 0x12c   :  { %v159_v48 = vsub.f32 1.0, %v157_v45  ;;  %v158_v49 = vmul.f32 %v226_v47, %v148_v46 }
 0x12e   :  { %v163_v50 = vsub.f32 0.0, %v159_v48  ;;  %v160_v51 = vsub.f32 1.0, %v158_v49 }
 0x130   :  { %v165_v52 = vsel %vm161_vm2, %v159_v48, %v163_v50  ;;  %v164_v55 = vsub.f32 0.0, %v160_v51 }
 0x131   :  { %v167_v54 = vadd.f32 1.0, %v165_v52 }
 0x132   :  { %v166_v57 = vsel %vm162_vm3, %v160_v51, %v164_v55 }
 0x133   :  { %v169_v56 = vmul.f32 %v167_v54, %v119_v53  ;;  %v168_v59 = vadd.f32 1.0, %v166_v57 }
 0x135   :  { %171 = vst [vmem:[#allocation7] sm:$0xff] %v169_v56  ;;  %v170_v60 = vmul.f32 %v168_v59, %v120_v58 }
 0x137   :  { %172 = vst [vmem:[#allocation7 + $0x8] sm:$0xff] %v170_v60 }
 0x138   :  { %282 = shalt.err (!%p279_p6)
}
 0x139   :  { %s283_s15 = scalar_lea.hbm %s370_s3, 256 }
 0x13a   :  { %p284_p7 = scmp.ne.s32.totalorder %s370_s3, %s283_s15  ;;  %p287_p8 = scmp.lt.u32.totalorder %s283_s15, %s370_s3 }
 0x13c   :  { %p289_p9 = pnand %p287_p8, %p284_p7 }
 0x13e   :  { %292 = shalt.err (!%p289_p9)
}
 0x13f   :  { %s306_s20 = smov 128   ;;  %s307_s21 = smov 8  }
 0x140   :  { %184 = dma.vmem_to_hbm [thread:$0]  %s179_s2, 256, %s370_s3, [#allocation4], %s306_s20, %s306_s20, %s307_s21  }
 0x141   :  { %297 = dma.done.wait [#allocation4], 256  }
 0x142   :  { %298 = vsyncadd [#allocation4], 4294967040 }
 0x143   :  { %188 = vsyncpa [#allocation3], 1 }
 0x144   :  { %189 = vsyncpa [#allocation6], 1 }
 0x145   :  { %190 = vsyncpa [#allocation4], 1 }

// kernel: tpu_custom_call.1
= control target key start
LH: loop header
LB: loop body
LE: loop exit
PB: predicated region body
PF: predicated region fallthrough
CT: control target
= control target key end

     0   :  { %8 = vsyncpa [#allocation3], 0  ;;  %s367_s0 = inlined_call_operand.hbm [shape: bf16[16,32], index: 0, kind: input, shape index: {}]   ;;  %s368_s1 = inlined_call_operand.hbm [shape: bf16[32,128], index: 1, kind: input, shape index: {}]   ;;  %s369_s2 = inlined_call_operand.vmem [shape: f32[1,128], index: 2, kind: input, shape index: {}]   ;;  %s370_s3 = inlined_call_operand.hbm [shape: f32[16,128], index: 3, kind: output, shape index: {}]  }
   0x1   :  { %9 = vsyncpa [#allocation6], 0 }
   0x2   :  { %10 = vsyncpa [#allocation4], 0  ;;  %s299_s12 = smov [#allocation2]   ;;  %s227_s16 = scalar_lea.hbm %s367_s0, 128 }
   0x3   :  { %s16_s13 = sshll.u32 %s299_s12, 4  ;;  %p228_p0 = scmp.ne.s32.totalorder %s367_s0, %s227_s16  ;;  %s17_s13 = int_to_ptr.vmem [resolvable:$true] %s16_s13 }
   0x4   :  { %p231_p1 = scmp.lt.u32.totalorder %s227_s16, %s367_s0 }
   0x6   :  { %p233_p2 = pnand %p231_p1, %p228_p0 }
   0x8   :  { %236 = shalt.err (!%p233_p2)
}
   0x9   :  { %s237_s21 = scalar_lea.vmem %s17_s13, 128  ;;  %p242_p4 = scmp.lt.s32.totalorder %s17_s13, %s17_s13 }
   0xa   :  { %p238_p3 = scmp.ne.s32.totalorder %s17_s13, %s237_s21  ;;  %p243_p5 = scmp.lt.s32.totalorder %s237_s21, %s237_s21 }
   0xc   :  { %p244_p6 = por %p243_p5, %p242_p4 }
   0xe   :  { %p245_p7 = pnand %p244_p6, %p238_p3 }
  0x10   :  { %248 = shalt.err (!%p245_p7)
}
  0x11   :  { %s300_s22 = smov 64   ;;  %s301_s23 = smov 4  }
  0x12   :  { %22 = dma.hbm_to_vmem [thread:$0]  %s367_s0, 128, %s17_s13, [#allocation3], %s300_s22, %s300_s22, %s301_s23  }
  0x13   :  { %s302_s26 = smov [#allocation5]   ;;  %s249_s30 = scalar_lea.hbm %s368_s1, 256 }
  0x14   :  { %s28_s27 = sshll.u32 %s302_s26, 4  ;;  %p250_p8 = scmp.ne.s32.totalorder %s368_s1, %s249_s30  ;;  %s29_s27 = int_to_ptr.vmem [resolvable:$true] %s28_s27 }
  0x15   :  { %p253_p9 = scmp.lt.u32.totalorder %s249_s30, %s368_s1 }
  0x17   :  { %p255_p10 = pnand %p253_p9, %p250_p8 }
  0x19   :  { %258 = shalt.err (!%p255_p10)
}
  0x1a   :  { %s259_s8 = scalar_lea.vmem %s29_s27, 256  ;;  %p264_p12 = scmp.lt.s32.totalorder %s29_s27, %s29_s27 }
  0x1b   :  { %p260_p11 = scmp.ne.s32.totalorder %s29_s27, %s259_s8  ;;  %p265_p13 = scmp.lt.s32.totalorder %s259_s8, %s259_s8 }
  0x1d   :  { %p266_p0 = por %p265_p13, %p264_p12 }
  0x1f   :  { %p267_p1 = pnand %p266_p0, %p260_p11 }
  0x21   :  { %270 = shalt.err (!%p267_p1)
}
  0x22   :  { %34 = dma.hbm_to_vmem [thread:$0]  %s368_s1, 256, %s29_s27, [#allocation6], %s300_s22, %s300_s22, %s301_s23  }
  0x23   :  { %293 = dma.done.wait [#allocation3], 128  }
  0x24   :  { %294 = vsyncadd [#allocation3], 4294967168 }
  0x25   :  { %295 = dma.done.wait [#allocation6], 256  }
  0x26   :  { %296 = vsyncadd [#allocation6], 4294967040  ;;  %v303_v0 = vmov 0.0   ;;  %vm304_vm0 = vmmov 0   ;;  %v216_v1 = vld [vmem:[#allocation5] sm:$0xff]   ;;  %v217_v2 = vld [vmem:[#allocation5 + $0x8] sm:$0xff]  }
  0x27   :  { %199 = vmatprep.subr.bf16.mxu0 %v303_v0  ;;  %203 = vmatprep.mubr.msk.bf16.mxu0 %vm304_vm0, %v303_v0  ;;  %v218_v3 = vld [vmem:[#allocation2] sm:$0xff]   ;;  %vm74_vm1 = vcmask 261120   ;;  %s305_s1 = smov [#allocation7]  }
  0x28   :  { %200 = vmatpush3.bf16.msra.mxu0 %v216_v1  ;;  %v191_v4 = vld [vmem:[%s369_s2] ss:$0 sm:$0xff]  ;;  %s178_s2 = sshll.u32 %s305_s1, 4  ;;  %s179_s2 = int_to_ptr.vmem [resolvable:$true] %s178_s2 }
  0x29   :  { %201 = vmatprep.subr.bf16.mxu0 %v303_v0  ;;  %s271_s12 = scalar_lea.vmem %s179_s2, 256  ;;  %p276_p3 = scmp.lt.s32.totalorder %s179_s2, %s179_s2 }
  0x2a   :  { %p272_p2 = scmp.ne.s32.totalorder %s179_s2, %s271_s12  ;;  %p277_p4 = scmp.lt.s32.totalorder %s271_s12, %s271_s12 }
  0x2c   :  { %202 = vmatpush3.bf16.msra.mxu0 %v217_v2  ;;  %p278_p5 = por %p277_p4, %p276_p3 }
  0x2e   :  { %p279_p6 = pnand %p278_p5, %p272_p2 }
  0x2f   :  { %204 = vmatmul.mubr.msk.bf16.vlgmr.msra.gmra.mrb[0].mxu0 %vm74_vm1, %v218_v3 }
 0x102   :  { %v112_v5 = vpop.f32.mrb[0].mxu0 }
 0x103   :  { %v113_v6 = vadd.f32 %v191_v4, %v112_v5  ;;  %v205_v7 = vpop.f32.mrb[1].mxu0 }
 0x104   :  { %v115_v8 = vpop.f32.mrb[2].mxu0 }
 0x105   :  { %v121_v9 = vmul.f32 0.70710677, %v113_v6  ;;  %v116_v10 = vadd.f32 %v191_v4, %v115_v8  ;;  %v206_v11 = vpop.f32.mrb[3].mxu0  ;;  %v119_v53 = vmul.f32 0.5, %v113_v6 }
 0x107   :  { %v123_v12 = vand.u32 2147483647, %v121_v9  ;;  %v122_v13 = vmul.f32 0.70710677, %v116_v10  ;;  %vm161_vm2 = vcmp.ge.f32.partialorder %v121_v9, 0.0  ;;  %v120_v58 = vmul.f32 0.5, %v116_v10 }
 0x109   :  { %v125_v14 = vmul.f32 0.3275911, %v123_v12  ;;  %v124_v15 = vand.u32 2147483647, %v122_v13  ;;  %v149_v19 = vsub.f32 0.0, %v123_v12  ;;  %vm162_vm3 = vcmp.ge.f32.partialorder %v122_v13, 0.0 }
 0x10b   :  { %v127_v16 = vadd.f32 1.0, %v125_v14  ;;  %v126_v17 = vmul.f32 0.3275911, %v124_v15  ;;  %v150_v20 = vsub.f32 0.0, %v124_v15  ;;  %v151_v22 = vmul.f32 %v149_v19, %v123_v12 }
 0x10d   :  { %219 = vrcp.f32 %v127_v16  ;;  %v128_v18 = vadd.f32 1.0, %v126_v17  ;;  %v152_v26 = vmul.f32 %v150_v20, %v124_v15  ;;  %v153_v27 = vmul.f32 1.442695, %v151_v22 }
 0x10f   :  { %221 = vrcp.f32 %v128_v18  ;;  %v155_v32 = vmul.f32 1.442695, %v152_v26 }
 0x110   :  { %223 = vpow2.f32 %v153_v27 }
 0x111   :  { %225 = vpow2.f32 %v155_v32 }
 0x117   :  { %v220_v21 = vpop.eup %219 }
 0x118   :  { %v131_v23 = vmul.f32 1.0614054, %v220_v21 }
 0x119   :  { %v222_v24 = vpop.eup %221 }
 0x11a   :  { %v133_v25 = vadd.f32 -1.4531521, %v131_v23  ;;  %v132_v28 = vmul.f32 1.0614054, %v222_v24  ;;  %v224_v43 = vpop.eup %223 }
 0x11b   :  { %v226_v47 = vpop.eup %225 }
 0x11c   :  { %v135_v29 = vmul.f32 %v220_v21, %v133_v25  ;;  %v134_v30 = vadd.f32 -1.4531521, %v132_v28 }
 0x11e   :  { %v137_v31 = vadd.f32 1.4214138, %v135_v29  ;;  %v136_v33 = vmul.f32 %v222_v24, %v134_v30 }
 0x120   :  { %v139_v34 = vmul.f32 %v220_v21, %v137_v31  ;;  %v138_v35 = vadd.f32 1.4214138, %v136_v33 }
 0x122   :  { %v141_v36 = vadd.f32 -0.28449672, %v139_v34  ;;  %v140_v37 = vmul.f32 %v222_v24, %v138_v35 }
 0x124   :  { %v143_v38 = vmul.f32 %v220_v21, %v141_v36  ;;  %v142_v39 = vadd.f32 -0.28449672, %v140_v37 }
 0x126   :  { %v145_v40 = vadd.f32 0.2548296, %v143_v38  ;;  %v144_v41 = vmul.f32 %v222_v24, %v142_v39 }
 0x128   :  { %v147_v42 = vmul.f32 %v220_v21, %v145_v40  ;;  %v146_v44 = vadd.f32 0.2548296, %v144_v41 }
 0x12a   :  { %v157_v45 = vmul.f32 %v224_v43, %v147_v42  ;;  %v148_v46 = vmul.f32 %v222_v24, %v146_v44 }
 0x12c   :  { %v159_v48 = vsub.f32 1.0, %v157_v45  ;;  %v158_v49 = vmul.f32 %v226_v47, %v148_v46 }
 0x12e   :  { %v163_v50 = vsub.f32 0.0, %v159_v48  ;;  %v160_v51 = vsub.f32 1.0, %v158_v49 }
 0x130   :  { %v165_v52 = vsel %vm161_vm2, %v159_v48, %v163_v50  ;;  %v164_v55 = vsub.f32 0.0, %v160_v51 }
 0x131   :  { %v167_v54 = vadd.f32 1.0, %v165_v52 }
 0x132   :  { %v166_v57 = vsel %vm162_vm3, %v160_v51, %v164_v55 }
 0x133   :  { %v169_v56 = vmul.f32 %v167_v54, %v119_v53  ;;  %v168_v59 = vadd.f32 1.0, %v166_v57 }
 0x135   :  { %171 = vst [vmem:[#allocation7] sm:$0xff] %v169_v56  ;;  %v170_v60 = vmul.f32 %v168_v59, %v120_v58 }
 0x137   :  { %172 = vst [vmem:[#allocation7 + $0x8] sm:$0xff] %v170_v60 }
 0x138   :  { %282 = shalt.err (!%p279_p6)
}
 0x139   :  { %s283_s15 = scalar_lea.hbm %s370_s3, 256 }
 0x13a   :  { %p284_p7 = scmp.ne.s32.totalorder %s370_s3, %s283_s15  ;;  %p287_p8 = scmp.lt.u32.totalorder %s283_s15, %s370_s3 }
 0x13c   :  { %p289_p9 = pnand %p287_p8, %p284_p7 }
 0x13e   :  { %292 = shalt.err (!%p289_p9)
}
 0x13f   :  { %s306_s20 = smov 128   ;;  %s307_s21 = smov 8  }
 0x140   :  { %184 = dma.vmem_to_hbm [thread:$0]  %s179_s2, 256, %s370_s3, [#allocation4], %s306_s20, %s306_s20, %s307_s21  }
 0x141   :  { %297 = dma.done.wait [#allocation4], 256  }
 0x142   :  { %298 = vsyncadd [#allocation4], 4294967040 }
 0x143   :  { %188 = vsyncpa [#allocation3], 1 }
 0x144   :  { %189 = vsyncpa [#allocation6], 1 }
 0x145   :  { %190 = vsyncpa [#allocation4], 1 }

</bundles_post_ra>
